<compile_context>
chip_gen: v7x
topology: tpu7x:2x2x1
jax: 0.10.0
libtpu: 0.0.40
codegen_flags: <defaults>
</compile_context>

<pallas_src>
import functools

import jax
import jax.numpy as jnp
from jax.experimental import pallas as pl
from jax.experimental.pallas import tpu as pltpu


# ---------------------------------------------------------------------------
# Kernels
# ---------------------------------------------------------------------------
def _add_pos_kernel(x_ref, pos_ref, o_ref):
    # x_ref: (TB, TC) tile of flattened activations; pos_ref: (1, TC) table
    # slice (sublane-broadcast add, native dtype — no upcast).
    o_ref[...] = (x_ref[...] + pos_ref[...]).astype(o_ref.dtype)


def _add_pos_dropout_kernel(x_ref, pos_ref, bits_ref, o_ref, *,
                            keep_thresh, scale):
    # Inverted dropout: bits are uniform int32 in [0, 2^31); drop iff
    # bits < keep_thresh (P = p), otherwise multiply by 1/(1-p).
    y = x_ref[...] + pos_ref[...]
    keep = bits_ref[...] >= jnp.int32(keep_thresh)
    scale_v = jnp.asarray(scale, dtype=y.dtype)
    o_ref[...] = jnp.where(keep, y * scale_v,
                           jnp.zeros((), dtype=y.dtype)).astype(o_ref.dtype)


# ---------------------------------------------------------------------------
# Tiling / generation heuristics
# ---------------------------------------------------------------------------
def _tpu_hints():
    """(vmem_capacity_bytes, multi_core) with safe fallbacks on any backend."""
    vmem_cap = 128 * 1024 * 1024     # v5e / v6e
    multi_core = False               # 1 TensorCore per chip
    try:
        kind = (getattr(jax.devices()[0], "device_kind", "") or "").lower()
        if "v7" in kind:             # v7x: 64 MiB VMEM / TC, 2 TCs per chip
            vmem_cap = 64 * 1024 * 1024
            multi_core = True
    except Exception:
        pass
    return vmem_cap, multi_core


def _choose_tiles(B, SD, itemsize, *, target_bytes, sub, force_split):
    """Pick (batch_tile, lane_tile) so one x-block is ~target_bytes."""
    # Lane (last-dim) tile: full row if it fits, else a large multiple of 128.
    if SD * itemsize <= target_bytes:
        tc = SD
    else:
        tc = max(128, ((target_bytes // itemsize) // 128) * 128)
        tc = min(tc, SD)

    # Batch (sublane) tile: fill the remaining budget, dtype-aware rounding.
    rows = max(1, target_bytes // max(tc * itemsize, 1))
    if rows >= B:
        tb = B
    else:
        tb = min(B, max(sub, (rows // sub) * sub))

    # Megacore-aware split: only force >=2 blocks where 2 TensorCores exist
    # (v7x); on v5e/v6e the extra grid step would be a pure regression.
    if force_split and B >= 2 * sub and pl.cdiv(B, tb) * pl.cdiv(SD, tc) == 1:
        half = (((B + 1) // 2) + sub - 1) // sub * sub
        if half < B:
            tb = half
    return tb, tc


# ---------------------------------------------------------------------------
# Wrapper
# ---------------------------------------------------------------------------
def positional_embedding_forward(x, pos_weight, *, dropout_p=0.1,
                                 training=False, rng=None):
    """x: (B, S, D) float array; pos_weight: (max_len, D) embedding table."""
    B, S, D = x.shape
    SD = S * D
    dropout_p = float(dropout_p)
    assert 0.0 <= dropout_p < 1.0, "dropout_p must be in [0, 1)"
    use_dropout = training and dropout_p > 0.0

    # Layout plumbing (free, contiguous metadata reshapes): flatten the last
    # two dims so stores are lane-dense (large multiple of 128).
    x2 = x.reshape(B, SD)
    pos2 = pos_weight[:S, :].astype(x.dtype).reshape(1, SD)

    itemsize = x2.dtype.itemsize
    sub = 8 * max(1, 4 // itemsize)            # f32->8, bf16->16, int8/fp8->32

    vmem_cap, multi_core = _tpu_hints()
    # 128 MiB chips (v5e/v6e): ~4 MiB blocks; 64 MiB chip (v7x): ~2 MiB.
    target_bytes = (4 << 20) if vmem_cap >= (100 << 20) else (2 << 20)
    tb, tc = _choose_tiles(B, SD, itemsize, target_bytes=target_bytes,
                           sub=sub, force_split=multi_core)
    grid = (pl.cdiv(B, tb), pl.cdiv(SD, tc))

    # VMEM budget derived from the actual block bytes (double-buffered in/out
    # + bits + the small pos slice), capped per generation instead of a
    # hard-coded 32 MiB.
    blk_x = tb * tc * itemsize
    blk_bits = tb * tc * 4 if use_dropout else 0
    blk_pos = tc * itemsize
    # TODO(synk): pos-table BlockSpec could use pipeline_mode=pl.Buffered(1)
    # (constant block index) to halve its footprint on v7x for huge S*D.
    needed = 2 * (2 * blk_x + blk_bits + blk_pos)
    cap = (48 << 20) if vmem_cap <= (64 << 20) else (64 << 20)
    vmem_limit = int(min(max(needed + (4 << 20), 16 << 20), cap))

    x_spec = pl.BlockSpec((tb, tc), lambda b, c: (b, c))
    pos_spec = pl.BlockSpec((1, tc), lambda b, c: (0, c))
    out_spec = pl.BlockSpec((tb, tc), lambda b, c: (b, c))
    compiler_params = pltpu.CompilerParams(
        dimension_semantics=("parallel",) * len(grid),
        vmem_limit_bytes=vmem_limit,
    )

    if use_dropout:
        # TODO(synk): random bits come from jax.random in the wrapper (the TPU
        # hardware PRNG primitives have no interpret/CPU lowering), so the
        # mask is not bitwise-identical to torch.nn.Dropout — distribution and
        # inverted scaling match.
        if rng is None:
            rng = jax.random.PRNGKey(0)
        bits = jax.random.bits(rng, (B, SD), dtype=jnp.uint32)
        bits = (bits >> 1).astype(jnp.int32)            # uniform over [0, 2^31)
        keep_thresh = min(int(round(dropout_p * (1 << 31))), (1 << 31) - 1)
        kernel = functools.partial(_add_pos_dropout_kernel,
                                   keep_thresh=keep_thresh,
                                   scale=1.0 / (1.0 - dropout_p))
        out2 = pl.pallas_call(
            kernel,
            out_shape=jax.ShapeDtypeStruct((B, SD), x.dtype),
            grid=grid,
            in_specs=[x_spec, pos_spec, pl.BlockSpec((tb, tc), lambda b, c: (b, c))],
            out_specs=out_spec,
            compiler_params=compiler_params,
        )(x2, pos2, bits)
    else:
        out2 = pl.pallas_call(
            _add_pos_kernel,
            out_shape=jax.ShapeDtypeStruct((B, SD), x.dtype),
            grid=grid,
            in_specs=[x_spec, pos_spec],
            out_specs=out_spec,
            compiler_params=compiler_params,
        )(x2, pos2)

    return out2.reshape(B, S, D)


# ---------------------------------------------------------------------------
# Self-test
# ---------------------------------------------------------------------------
if __name__ == "__main__":
    B, S, D = 2, 8, 32
    MAX_LEN = 16
    DROPOUT = 0.1

    key = jax.random.PRNGKey(0)
    kx, kw, kd = jax.random.split(key, 3)
    x = jax.random.normal(kx, (B, S, D), dtype=jnp.float32)
    # nn.Embedding default init: N(0, 1)
    pos_weight = jax.random.normal(kw, (MAX_LEN, D), dtype=jnp.float32)

    # Eval mode (dropout == identity), matches module.eval().
    out = positional_embedding_forward(x, pos_weight, dropout_p=DROPOUT,
                                       training=False)
    out = jax.block_until_ready(out)
    ref = x + pos_weight[:S, :][None, :, :]
    assert out.shape == (B, S, D)
    assert jnp.allclose(out, ref, atol=1e-6, rtol=1e-6)

    # Training mode: exercise the dropout path (each element is 0 or scaled).
    out_tr = positional_embedding_forward(x, pos_weight, dropout_p=DROPOUT,
                                          training=True, rng=kd)
    out_tr = jax.block_until_ready(out_tr)
    scaled = ref * jnp.float32(1.0 / (1.0 - DROPOUT))
    ok = jnp.logical_or(out_tr == 0.0, jnp.isclose(out_tr, scaled, atol=1e-5))
    assert out_tr.shape == (B, S, D)
    assert bool(jnp.all(ok))

    print("KERNEL_OK")
</pallas_src>

<mosaic_0001>
module attributes {stable_mosaic.version = 11 : i64} {
  func.func @_add_pos_kernel(%arg0: i32, %arg1: i32, %arg2: memref<2x256xf32, #tpu.memory_space<vmem>>, %arg3: memref<1x256xf32, #tpu.memory_space<vmem>>, %arg4: memref<2x256xf32, #tpu.memory_space<vmem>>) attributes {dimension_semantics = [#tpu.dimension_semantics<parallel>, #tpu.dimension_semantics<parallel>], iteration_bounds = array<i64: 1, 1>, scalar_prefetch = 0 : i64, scratch_operands = 0 : i64, tpu.core_type = #tpu.core_type<tc>, window_params = [{transform_indices = @transform_0, window_bounds = array<i64: 2, 256>}, {transform_indices = @transform_1, window_bounds = array<i64: 1, 256>}, {transform_indices = @transform_2, window_bounds = array<i64: 2, 256>}]} {
    %c0 = arith.constant 0 : index
    %c0_0 = arith.constant 0 : index
    %0 = vector.load %arg2[%c0, %c0_0] : memref<2x256xf32, #tpu.memory_space<vmem>>, vector<2x256xf32>
    %c0_1 = arith.constant 0 : index
    %c0_2 = arith.constant 0 : index
    %1 = vector.load %arg3[%c0_1, %c0_2] : memref<1x256xf32, #tpu.memory_space<vmem>>, vector<1x256xf32>
    %2 = vector.broadcast %1 : vector<1x256xf32> to vector<2x256xf32>
    %3 = arith.addf %0, %2 : vector<2x256xf32>
    %c0_3 = arith.constant 0 : index
    %c0_4 = arith.constant 0 : index
    %4 = vector.load %arg4[%c0_3, %c0_4] : memref<2x256xf32, #tpu.memory_space<vmem>>, vector<2x256xf32>
    tpu.vector_store %arg4[%c0_3, %c0_4], %3 {strides = array<i32>} : memref<2x256xf32, #tpu.memory_space<vmem>>, vector<2x256xf32>,
    return
  }
  func.func @transform_0(%arg0: i32, %arg1: i32) -> (i32, i32) {
    %c0_i32 = arith.constant 0 : i32
    return %arg0, %arg1 : i32, i32
  }
  func.func @transform_1(%arg0: i32, %arg1: i32) -> (i32, i32) {
    %c0_i32 = arith.constant 0 : i32
    %c0_i32_0 = arith.constant 0 : i32
    return %c0_i32, %arg1 : i32, i32
  }
  func.func @transform_2(%arg0: i32, %arg1: i32) -> (i32, i32) {
    %c0_i32 = arith.constant 0 : i32
    return %arg0, %arg1 : i32, i32
  }
}

</mosaic_0001>

<bundles_post_ra>
// kernel: tpu_custom_call.1
= control target key start
LH: loop header
LB: loop body
LE: loop exit
PB: predicated region body
PF: predicated region fallthrough
CT: control target
= control target key end

     0   :  { %7 = vsyncpa [#allocation3], 0  ;;  %s157_s0 = inlined_call_operand.hbm [shape: f32[2,256], index: 0, kind: input, shape index: {}]   ;;  %s158_s1 = inlined_call_operand.vmem [shape: f32[1,256], index: 1, kind: input, shape index: {}]   ;;  %s159_s2 = inlined_call_operand.hbm [shape: f32[2,256], index: 2, kind: output, shape index: {}]  }
   0x1   :  { %8 = vsyncpa [#allocation4], 0  ;;  %s112_s9 = smov [#allocation2]   ;;  %s64_s13 = scalar_lea.hbm %s157_s0, 64 }
   0x2   :  { %s15_s10 = sshll.u32 %s112_s9, 4  ;;  %p65_p0 = scmp.ne.s32.totalorder %s157_s0, %s64_s13  ;;  %s16_s10 = int_to_ptr.vmem [resolvable:$true] %s15_s10 }
   0x3   :  { %p68_p1 = scmp.lt.u32.totalorder %s64_s13, %s157_s0 }
   0x5   :  { %p70_p2 = pnand %p68_p1, %p65_p0 }
   0x7   :  { %73 = shalt.err (!%p70_p2)
}
   0x8   :  { %s74_s18 = scalar_lea.vmem %s16_s10, 64  ;;  %p79_p4 = scmp.lt.s32.totalorder %s16_s10, %s16_s10 }
   0x9   :  { %p75_p3 = scmp.ne.s32.totalorder %s16_s10, %s74_s18  ;;  %p80_p5 = scmp.lt.s32.totalorder %s74_s18, %s74_s18 }
   0xb   :  { %p81_p6 = por %p80_p5, %p79_p4 }
   0xd   :  { %p82_p7 = pnand %p81_p6, %p75_p3 }
   0xf   :  { %85 = shalt.err (!%p82_p7)
}
  0x10   :  { %18 = dma.hbm_to_vmem [thread:$0]  %s157_s0, 64, %s16_s10, [#allocation3]  }
  0x11   :  { %108 = dma.done.wait [#allocation3], 64  }
  0x12   :  { %109 = vsyncadd [#allocation3], 4294967232  ;;  %v27_v0 = vlaneseq  ;;  %v113_v1 = vmov 1983009808   ;;  %v25_v7 = vld [vmem:[%s158_s1] sm:$0x3] }
  0x13   :  { %v37_v2 = vunpack.c.l.s4 %v113_v1  ;;  %v24_v12 = vld [vmem:[#allocation2] sm:$0xf]  ;;  %s114_s23 = smov [#allocation5]  }
  0x14   :  { %v28_v3 = vshrl.u32 %v27_v0, 7  ;;  %s52_s0 = sshll.u32 %s114_s23, 4  ;;  %s53_s0 = int_to_ptr.vmem [resolvable:$true] %s52_s0 }
  0x15   :  { %v38_v6 = vunpack.c.0.s8 %v37_v2  ;;  %s86_s24 = scalar_lea.vmem %s53_s0, 64  ;;  %p91_p9 = scmp.lt.s32.totalorder %s53_s0, %s53_s0 }
  0x16   :  { %v29_v4 = vsub.s32 0, %v28_v3  ;;  %v33_v5 = vsub.s32 1, %v28_v3  ;;  %p87_p8 = scmp.ne.s32.totalorder %s53_s0, %s86_s24  ;;  %p92_p10 = scmp.lt.s32.totalorder %s86_s24, %s86_s24 }
  0x17   :  { %v41_v10 = vsub.s32 %v38_v6, %v28_v3 }
  0x18   :  { %v30_v8 = vrot.slane %v25_v7, %v29_v4  ;;  %v34_v9 = vrot.slane %v25_v7, %v33_v5  ;;  %p93_p11 = por %p92_p10, %p91_p9 }
  0x1a   :  { %v35_v11 = vcombine.low %v30_v8, %v34_v9  ;;  %p94_p12 = pnand %p93_p11, %p87_p8 }
  0x1c   :  { %v42_v13 = vrot.slane %v35_v11, %v41_v10 }
  0x1e   :  { %v44_v14 = vadd.f32 %v42_v13, %v24_v12 }
  0x20   :  { %45 = vst [vmem:[#allocation5] sm:$0xf] %v44_v14 }
  0x21   :  { %97 = shalt.err (!%p94_p12)
}
  0x22   :  { %s98_s26 = scalar_lea.hbm %s159_s2, 64 }
  0x23   :  { %p99_p13 = scmp.ne.s32.totalorder %s159_s2, %s98_s26  ;;  %p102_p0 = scmp.lt.u32.totalorder %s98_s26, %s159_s2 }
  0x25   :  { %p104_p1 = pnand %p102_p0, %p99_p13 }
  0x27   :  { %107 = shalt.err (!%p104_p1)
}
  0x28   :  { %55 = dma.vmem_to_hbm [thread:$0]  %s53_s0, 64, %s159_s2, [#allocation4]  }
  0x29   :  { %110 = dma.done.wait [#allocation4], 64  }
  0x2a   :  { %111 = vsyncadd [#allocation4], 4294967232 }
  0x2b   :  { %59 = vsyncpa [#allocation3], 1 }
  0x2c   :  { %60 = vsyncpa [#allocation4], 1 }

</bundles_post_ra>
